<compile_context>
chip_gen: v7x
topology: tpu7x:2x2x1
jax: 0.10.0
libtpu: 0.0.40
codegen_flags: <defaults>
</compile_context>

<pallas_src>
import jax
import jax.numpy as jnp
from jax.experimental import pallas as pl
from jax.experimental.pallas import tpu as pltpu


# ---- model hyper-parameters (cmd_args stand-ins, kept small) ----------------
FEAT_DIM        = 16   # cmd_args.feat_dim
LATENT_DIM      = 64   # cmd_args.latent_dim
OUT_DIM         = 32   # cmd_args.out_dim
MAX_LV          = 3    # cmd_args.max_lv
NODES_PER_GRAPH = 32   # equal-sized graphs assumed (see JSON notes)
NUM_GRAPHS      = 4


def _s2v_mean_field_kernel(feat_ref, adj_ref, wn_ref, bn_ref, wc_ref, bc_ref,
                           wo_ref, bo_ref, out_ref):
    # Single step: all graphs' nodes folded onto one axis, adjacency is the
    # dense block-diagonal batch adjacency.
    x   = feat_ref[...]                                  # (N, F)  f32
    adj = adj_ref[...]                                   # (N, N)  f32, block-diag

    # input node linear (w_n2l) + relu  -> input_potential
    msg = jnp.dot(x, wn_ref[...], preferred_element_type=jnp.float32) + bn_ref[...]
    cur = jnp.maximum(msg, 0.0)

    # hoist loop invariants out of the statically-unrolled loop
    # (JAX does not CSE the repeated load / (1,L)->(N,L) broadcast).
    wc    = wc_ref[...]
    msg_b = msg + bc_ref[...]

    # mean-field message passing, max_lv levels; statically unrolled so the
    # LLO scheduler can overlap MXU and VPU work (esp. on v5e).
    for _ in range(MAX_LV):
        n2npool = jnp.dot(adj, cur, preferred_element_type=jnp.float32)
        cur = jnp.maximum(
            jnp.dot(n2npool, wc, preferred_element_type=jnp.float32) + msg_b, 0.0)

    # output projection (out_params) + relu
    node_out = jnp.maximum(
        jnp.dot(cur, wo_ref[...], preferred_element_type=jnp.float32) + bo_ref[...],
        0.0)

    # per-graph sum pooling (== subg_sp @ node_out), packed lane-dense into a
    # single (1, G*O) row so the output store is one full-lane unmasked write.
    parts = [
        jnp.sum(node_out[g * NODES_PER_GRAPH:(g + 1) * NODES_PER_GRAPH, :],
                axis=0, keepdims=True)                   # (1, O) per graph
        for g in range(NUM_GRAPHS)
    ]
    pooled = jnp.concatenate(parts, axis=1)              # (1, G*O)
    # final relu kept for semantic fidelity (mathematically redundant: the
    # summands are already non-negative) — one free VPU op on a single vreg.
    out_ref[...] = jnp.maximum(pooled, 0.0)


def graph_ebd_forward(node_feat, adj, params, *, num_graphs, nodes_per_graph):
    """node_feat (N, F) f32, adj (N, N) block-diagonal 0/1 f32 -> (G, O)."""
    wn, bn, wc, bc, wo, bo = params
    N, F = node_feat.shape
    L = wn.shape[1]
    O = wo.shape[1]
    G = num_graphs
    assert N == G * nodes_per_graph and adj.shape == (N, N)

    flops = (2 * (N * F * L
                  + MAX_LV * (N * N * L + N * L * L)
                  + N * L * O)
             + N * O)
    bytes_accessed = ((node_feat.size + adj.size
                       + sum(int(p.size) for p in params) + G * O) * 4)

    out = pl.pallas_call(
        _s2v_mean_field_kernel,
        out_shape=jax.ShapeDtypeStruct((1, G * O), jnp.float32),
        grid_spec=pltpu.PrefetchScalarGridSpec(
            num_scalar_prefetch=0,
            grid=(1,),                                   # single step: whole batch
            in_specs=[
                pl.BlockSpec((N, F),   lambda i: (0, 0)),   # folded node features
                pl.BlockSpec((N, N),   lambda i: (0, 0)),   # block-diagonal adjacency
                pl.BlockSpec(wn.shape, lambda i: (0, 0)),
                pl.BlockSpec(bn.shape, lambda i: (0, 0)),
                pl.BlockSpec(wc.shape, lambda i: (0, 0)),
                pl.BlockSpec(bc.shape, lambda i: (0, 0)),
                pl.BlockSpec(wo.shape, lambda i: (0, 0)),
                pl.BlockSpec(bo.shape, lambda i: (0, 0)),
            ],
            out_specs=pl.BlockSpec((1, G * O), lambda i: (0, 0)),  # lane-dense slab
        ),
        cost_estimate=pl.CostEstimate(
            flops=flops, transcendentals=0, bytes_accessed=bytes_accessed),
    )(node_feat, adj, wn, bn, wc, bc, wo, bo)
    return out.reshape(G, O)


def _reference(node_feat, adj, params, *, num_graphs, nodes_per_graph):
    wn, bn, wc, bc, wo, bo = params
    msg = node_feat @ wn + bn
    cur = jnp.maximum(msg, 0.0)
    for _ in range(MAX_LV):
        cur = jnp.maximum((adj @ cur) @ wc + bc + msg, 0.0)
    out = jnp.maximum(cur @ wo + bo, 0.0)
    pooled = out.reshape(num_graphs, nodes_per_graph, -1).sum(axis=1)
    return jnp.maximum(pooled, 0.0)


if __name__ == "__main__":
    key = jax.random.PRNGKey(0)
    k_feat, k_adj, k_wn, k_bn, k_wc, k_bc, k_wo, k_bo = jax.random.split(key, 8)

    G, NG, F = NUM_GRAPHS, NODES_PER_GRAPH, FEAT_DIM
    N = G * NG

    # Deterministic "batch of graphs": concatenated node features and the
    # block-diagonal batch adjacency (graphs in a batch never connect) — this
    # is exactly what the original model's PrepareFeatureLabel / sparse n2n
    # matrix provide, built here as part of input construction.
    node_feat = jax.random.normal(k_feat, (N, F), dtype=jnp.float32)
    adj_blocks = (jax.random.uniform(k_adj, (G, NG, NG)) < 0.1).astype(jnp.float32)
    eye_g = jnp.eye(G, dtype=jnp.float32)
    adj = jnp.einsum('gh,gnm->gnhm', eye_g, adj_blocks).reshape(N, N)

    # deterministic parameter init (synthetic; shapes per EmbedMeanField.__init__,
    # stored as (in_dim, out_dim) so the kernel computes x @ W).
    scale = 0.1
    params = (
        scale * jax.random.normal(k_wn, (FEAT_DIM, LATENT_DIM), jnp.float32),
        scale * jax.random.normal(k_bn, (1, LATENT_DIM), jnp.float32),
        scale * jax.random.normal(k_wc, (LATENT_DIM, LATENT_DIM), jnp.float32),
        scale * jax.random.normal(k_bc, (1, LATENT_DIM), jnp.float32),
        scale * jax.random.normal(k_wo, (LATENT_DIM, OUT_DIM), jnp.float32),
        scale * jax.random.normal(k_bo, (1, OUT_DIM), jnp.float32),
    )

    embed = graph_ebd_forward(node_feat, adj, params,
                              num_graphs=G, nodes_per_graph=NG)
    embed = jax.block_until_ready(embed)

    ref = _reference(node_feat, adj, params, num_graphs=G, nodes_per_graph=NG)
    assert embed.shape == (G, OUT_DIM)
    assert jnp.allclose(embed, ref, atol=1e-4, rtol=1e-4)

    print("KERNEL_OK")
</pallas_src>

<mosaic_0001>
module attributes {stable_mosaic.version = 11 : i64} {
  func.func @_s2v_mean_field_kernel(%arg0: i32, %arg1: memref<128x16xf32, #tpu.memory_space<vmem>>, %arg2: memref<128x128xf32, #tpu.memory_space<vmem>>, %arg3: memref<16x64xf32, #tpu.memory_space<vmem>>, %arg4: memref<1x64xf32, #tpu.memory_space<vmem>>, %arg5: memref<64x64xf32, #tpu.memory_space<vmem>>, %arg6: memref<1x64xf32, #tpu.memory_space<vmem>>, %arg7: memref<64x32xf32, #tpu.memory_space<vmem>>, %arg8: memref<1x32xf32, #tpu.memory_space<vmem>>, %arg9: memref<1x128xf32, #tpu.memory_space<vmem>>) attributes {dimension_semantics = [#tpu.dimension_semantics<arbitrary>], iteration_bounds = array<i64: 1>, scalar_prefetch = 0 : i64, scratch_operands = 0 : i64, tpu.core_type = #tpu.core_type<tc>, window_params = [{pipeline_mode = #tpu.pipeline_mode<synchronous>, transform_indices = @transform_0, window_bounds = array<i64: 128, 16>}, {pipeline_mode = #tpu.pipeline_mode<synchronous>, transform_indices = @transform_1, window_bounds = array<i64: 128, 128>}, {pipeline_mode = #tpu.pipeline_mode<synchronous>, transform_indices = @transform_2, window_bounds = array<i64: 16, 64>}, {pipeline_mode = #tpu.pipeline_mode<synchronous>, transform_indices = @transform_3, window_bounds = array<i64: 1, 64>}, {pipeline_mode = #tpu.pipeline_mode<synchronous>, transform_indices = @transform_4, window_bounds = array<i64: 64, 64>}, {pipeline_mode = #tpu.pipeline_mode<synchronous>, transform_indices = @transform_5, window_bounds = array<i64: 1, 64>}, {pipeline_mode = #tpu.pipeline_mode<synchronous>, transform_indices = @transform_6, window_bounds = array<i64: 64, 32>}, {pipeline_mode = #tpu.pipeline_mode<synchronous>, transform_indices = @transform_7, window_bounds = array<i64: 1, 32>}, {pipeline_mode = #tpu.pipeline_mode<synchronous>, transform_indices = @transform_8, window_bounds = array<i64: 1, 128>}]} {
    %c0 = arith.constant 0 : index
    %c0_0 = arith.constant 0 : index
    %0 = vector.load %arg1[%c0, %c0_0] : memref<128x16xf32, #tpu.memory_space<vmem>>, vector<128x16xf32>
    %c0_1 = arith.constant 0 : index
    %c0_2 = arith.constant 0 : index
    %1 = vector.load %arg2[%c0_1, %c0_2] : memref<128x128xf32, #tpu.memory_space<vmem>>, vector<128x128xf32>
    %c0_3 = arith.constant 0 : index
    %c0_4 = arith.constant 0 : index
    %2 = vector.load %arg3[%c0_3, %c0_4] : memref<16x64xf32, #tpu.memory_space<vmem>>, vector<16x64xf32>
    %cst = arith.constant dense<0.000000e+00> : vector<128x64xf32>
    %3 = tpu.matmul %0, %2, %cst {dimension_numbers = #tpu.dot_dimension_numbers<[1], [0], [0], [1], [0, 0, 1, 1], [], []>} : vector<128x16xf32>, vector<16x64xf32>, vector<128x64xf32> -> vector<128x64xf32>
    %c0_5 = arith.constant 0 : index
    %c0_6 = arith.constant 0 : index
    %4 = vector.load %arg4[%c0_5, %c0_6] : memref<1x64xf32, #tpu.memory_space<vmem>>, vector<1x64xf32>
    %5 = vector.broadcast %4 : vector<1x64xf32> to vector<128x64xf32>
    %6 = arith.addf %3, %5 : vector<128x64xf32>
    %cst_7 = arith.constant 0.000000e+00 : f32
    %7 = vector.broadcast %cst_7 : f32 to vector<128x64xf32>
    %8 = arith.maximumf %6, %7 : vector<128x64xf32>
    %c0_8 = arith.constant 0 : index
    %c0_9 = arith.constant 0 : index
    %9 = vector.load %arg5[%c0_8, %c0_9] : memref<64x64xf32, #tpu.memory_space<vmem>>, vector<64x64xf32>
    %c0_10 = arith.constant 0 : index
    %c0_11 = arith.constant 0 : index
    %10 = vector.load %arg6[%c0_10, %c0_11] : memref<1x64xf32, #tpu.memory_space<vmem>>, vector<1x64xf32>
    %11 = vector.broadcast %10 : vector<1x64xf32> to vector<128x64xf32>
    %12 = arith.addf %6, %11 : vector<128x64xf32>
    %cst_12 = arith.constant dense<0.000000e+00> : vector<128x64xf32>
    %13 = tpu.matmul %1, %8, %cst_12 {dimension_numbers = #tpu.dot_dimension_numbers<[1], [0], [0], [1], [0, 0, 1, 1], [], []>} : vector<128x128xf32>, vector<128x64xf32>, vector<128x64xf32> -> vector<128x64xf32>
    %cst_13 = arith.constant dense<0.000000e+00> : vector<128x64xf32>
    %14 = tpu.matmul %13, %9, %cst_13 {dimension_numbers = #tpu.dot_dimension_numbers<[1], [0], [0], [1], [0, 0, 1, 1], [], []>} : vector<128x64xf32>, vector<64x64xf32>, vector<128x64xf32> -> vector<128x64xf32>
    %15 = arith.addf %14, %12 : vector<128x64xf32>
    %cst_14 = arith.constant 0.000000e+00 : f32
    %16 = vector.broadcast %cst_14 : f32 to vector<128x64xf32>
    %17 = arith.maximumf %15, %16 : vector<128x64xf32>
    %cst_15 = arith.constant dense<0.000000e+00> : vector<128x64xf32>
    %18 = tpu.matmul %1, %17, %cst_15 {dimension_numbers = #tpu.dot_dimension_numbers<[1], [0], [0], [1], [0, 0, 1, 1], [], []>} : vector<128x128xf32>, vector<128x64xf32>, vector<128x64xf32> -> vector<128x64xf32>
    %cst_16 = arith.constant dense<0.000000e+00> : vector<128x64xf32>
    %19 = tpu.matmul %18, %9, %cst_16 {dimension_numbers = #tpu.dot_dimension_numbers<[1], [0], [0], [1], [0, 0, 1, 1], [], []>} : vector<128x64xf32>, vector<64x64xf32>, vector<128x64xf32> -> vector<128x64xf32>
    %20 = arith.addf %19, %12 : vector<128x64xf32>
    %cst_17 = arith.constant 0.000000e+00 : f32
    %21 = vector.broadcast %cst_17 : f32 to vector<128x64xf32>
    %22 = arith.maximumf %20, %21 : vector<128x64xf32>
    %cst_18 = arith.constant dense<0.000000e+00> : vector<128x64xf32>
    %23 = tpu.matmul %1, %22, %cst_18 {dimension_numbers = #tpu.dot_dimension_numbers<[1], [0], [0], [1], [0, 0, 1, 1], [], []>} : vector<128x128xf32>, vector<128x64xf32>, vector<128x64xf32> -> vector<128x64xf32>
    %cst_19 = arith.constant dense<0.000000e+00> : vector<128x64xf32>
    %24 = tpu.matmul %23, %9, %cst_19 {dimension_numbers = #tpu.dot_dimension_numbers<[1], [0], [0], [1], [0, 0, 1, 1], [], []>} : vector<128x64xf32>, vector<64x64xf32>, vector<128x64xf32> -> vector<128x64xf32>
    %25 = arith.addf %24, %12 : vector<128x64xf32>
    %cst_20 = arith.constant 0.000000e+00 : f32
    %26 = vector.broadcast %cst_20 : f32 to vector<128x64xf32>
    %27 = arith.maximumf %25, %26 : vector<128x64xf32>
    %c0_21 = arith.constant 0 : index
    %c0_22 = arith.constant 0 : index
    %28 = vector.load %arg7[%c0_21, %c0_22] : memref<64x32xf32, #tpu.memory_space<vmem>>, vector<64x32xf32>
    %cst_23 = arith.constant dense<0.000000e+00> : vector<128x32xf32>
    %29 = tpu.matmul %27, %28, %cst_23 {dimension_numbers = #tpu.dot_dimension_numbers<[1], [0], [0], [1], [0, 0, 1, 1], [], []>} : vector<128x64xf32>, vector<64x32xf32>, vector<128x32xf32> -> vector<128x32xf32>
    %c0_24 = arith.constant 0 : index
    %c0_25 = arith.constant 0 : index
    %30 = vector.load %arg8[%c0_24, %c0_25] : memref<1x32xf32, #tpu.memory_space<vmem>>, vector<1x32xf32>
    %31 = vector.broadcast %30 : vector<1x32xf32> to vector<128x32xf32>
    %32 = arith.addf %29, %31 : vector<128x32xf32>
    %cst_26 = arith.constant 0.000000e+00 : f32
    %33 = vector.broadcast %cst_26 : f32 to vector<128x32xf32>
    %34 = arith.maximumf %32, %33 : vector<128x32xf32>
    %35 = vector.extract_strided_slice %34 {offsets = [0, 0], sizes = [32, 32], strides = [1, 1]} : vector<128x32xf32> to vector<32x32xf32>
    %cst_27 = arith.constant dense<0.000000e+00> : vector<32xf32>
    %36 = vector.multi_reduction <add>, %35, %cst_27 [0] : vector<32x32xf32> to vector<32xf32>
    %37 = vector.shape_cast %36 : vector<32xf32> to vector<1x32xf32>
    %38 = vector.extract_strided_slice %34 {offsets = [32, 0], sizes = [32, 32], strides = [1, 1]} : vector<128x32xf32> to vector<32x32xf32>
    %cst_28 = arith.constant dense<0.000000e+00> : vector<32xf32>
    %39 = vector.multi_reduction <add>, %38, %cst_28 [0] : vector<32x32xf32> to vector<32xf32>
    %40 = vector.shape_cast %39 : vector<32xf32> to vector<1x32xf32>
    %41 = vector.extract_strided_slice %34 {offsets = [64, 0], sizes = [32, 32], strides = [1, 1]} : vector<128x32xf32> to vector<32x32xf32>
    %cst_29 = arith.constant dense<0.000000e+00> : vector<32xf32>
    %42 = vector.multi_reduction <add>, %41, %cst_29 [0] : vector<32x32xf32> to vector<32xf32>
    %43 = vector.shape_cast %42 : vector<32xf32> to vector<1x32xf32>
    %44 = vector.extract_strided_slice %34 {offsets = [96, 0], sizes = [32, 32], strides = [1, 1]} : vector<128x32xf32> to vector<32x32xf32>
    %cst_30 = arith.constant dense<0.000000e+00> : vector<32xf32>
    %45 = vector.multi_reduction <add>, %44, %cst_30 [0] : vector<32x32xf32> to vector<32xf32>
    %46 = vector.shape_cast %45 : vector<32xf32> to vector<1x32xf32>
    %47 = tpu.concatenate %37, %40, %43, %46 in 1 : vector<1x32xf32>, vector<1x32xf32>, vector<1x32xf32>, vector<1x32xf32> -> vector<1x128xf32>
    %cst_31 = arith.constant 0.000000e+00 : f32
    %48 = vector.broadcast %cst_31 : f32 to vector<1x128xf32>
    %49 = arith.maximumf %47, %48 : vector<1x128xf32>
    %c0_32 = arith.constant 0 : index
    %c0_33 = arith.constant 0 : index
    %50 = vector.load %arg9[%c0_32, %c0_33] : memref<1x128xf32, #tpu.memory_space<vmem>>, vector<1x128xf32>
    tpu.vector_store %arg9[%c0_32, %c0_33], %49 {strides = array<i32>} : memref<1x128xf32, #tpu.memory_space<vmem>>, vector<1x128xf32>,
    return
  }
  func.func @transform_0(%arg0: i32) -> (i32, i32) {
    %c0_i32 = arith.constant 0 : i32
    %c0_i32_0 = arith.constant 0 : i32
    %c0_i32_1 = arith.constant 0 : i32
    return %c0_i32, %c0_i32_0 : i32, i32
  }
  func.func @transform_1(%arg0: i32) -> (i32, i32) {
    %c0_i32 = arith.constant 0 : i32
    %c0_i32_0 = arith.constant 0 : i32
    %c0_i32_1 = arith.constant 0 : i32
    return %c0_i32, %c0_i32_0 : i32, i32
  }
  func.func @transform_2(%arg0: i32) -> (i32, i32) {
    %c0_i32 = arith.constant 0 : i32
    %c0_i32_0 = arith.constant 0 : i32
    %c0_i32_1 = arith.constant 0 : i32
    return %c0_i32, %c0_i32_0 : i32, i32
  }
  func.func @transform_3(%arg0: i32) -> (i32, i32) {
    %c0_i32 = arith.constant 0 : i32
    %c0_i32_0 = arith.constant 0 : i32
    %c0_i32_1 = arith.constant 0 : i32
    return %c0_i32, %c0_i32_0 : i32, i32
  }
  func.func @transform_4(%arg0: i32) -> (i32, i32) {
    %c0_i32 = arith.constant 0 : i32
    %c0_i32_0 = arith.constant 0 : i32
    %c0_i32_1 = arith.constant 0 : i32
    return %c0_i32, %c0_i32_0 : i32, i32
  }
  func.func @transform_5(%arg0: i32) -> (i32, i32) {
    %c0_i32 = arith.constant 0 : i32
    %c0_i32_0 = arith.constant 0 : i32
    %c0_i32_1 = arith.constant 0 : i32
    return %c0_i32, %c0_i32_0 : i32, i32
  }
  func.func @transform_6(%arg0: i32) -> (i32, i32) {
    %c0_i32 = arith.constant 0 : i32
    %c0_i32_0 = arith.constant 0 : i32
    %c0_i32_1 = arith.constant 0 : i32
    return %c0_i32, %c0_i32_0 : i32, i32
  }
  func.func @transform_7(%arg0: i32) -> (i32, i32) {
    %c0_i32 = arith.constant 0 : i32
    %c0_i32_0 = arith.constant 0 : i32
    %c0_i32_1 = arith.constant 0 : i32
    return %c0_i32, %c0_i32_0 : i32, i32
  }
  func.func @transform_8(%arg0: i32) -> (i32, i32) {
    %c0_i32 = arith.constant 0 : i32
    %c0_i32_0 = arith.constant 0 : i32
    %c0_i32_1 = arith.constant 0 : i32
    return %c0_i32, %c0_i32_0 : i32, i32
  }
}

</mosaic_0001>

<bundles_post_ra>
// kernel: tpu_custom_call.1
= control target key start
LH: loop header
LB: loop body
LE: loop exit
PB: predicated region body
PF: predicated region fallthrough
CT: control target
= control target key end

     0   :  { %vm71_vm0 = vcmask 130048   ;;  %s3173_s0 = inlined_call_operand.vmem [shape: f32[128,16], index: 0, kind: input, shape index: {}]   ;;  %s3174_s1 = inlined_call_operand.vmem [shape: f32[128,128], index: 1, kind: input, shape index: {}]   ;;  %s3175_s2 = inlined_call_operand.vmem [shape: f32[16,64], index: 2, kind: input, shape index: {}]   ;;  %s3176_s3 = inlined_call_operand.vmem [shape: f32[1,64], index: 3, kind: input, shape index: {}]   ;;  %s3177_s4 = inlined_call_operand.vmem [shape: f32[64,64], index: 4, kind: input, shape index: {}]   ;;  %s3178_s5 = inlined_call_operand.vmem [shape: f32[1,64], index: 5, kind: input, shape index: {}]   ;;  %s3179_s6 = inlined_call_operand.vmem [shape: f32[64,32], index: 6, kind: input, shape index: {}]   ;;  %s3180_s7 = inlined_call_operand.vmem [shape: f32[1,32], index: 7, kind: input, shape index: {}]   ;;  %s3181_s8 = inlined_call_operand.hbm [shape: f32[1,128], index: 8, kind: output, shape index: {}]  }
   0x1   :  { %v62_v0 = vld [vmem:[%s3175_s2] sm:$0xff]  ;;  %v63_v1 = vld [vmem:[%s3175_s2 + $0x8] sm:$0xff]  ;;  %v32_v5 = vld [vmem:[%s3173_s0 + $0x10] sm:$0xff] }
   0x2   :  { %v30_v2 = vld [vmem:[%s3173_s0] sm:$0xff]  ;;  %v2333_v3 = vpack.c.bf16 %v63_v1, %v62_v0  ;;  %v31_v4 = vld [vmem:[%s3173_s0 + $0x8] sm:$0xff] }
   0x3   :  { %1981 = vmatprep.mubr.msk.f32.mxu0 %vm71_vm0, %v30_v2 }
   0x4   :  { %2334 = vmatprep.subr.bf16.mxu0 %v2333_v3 }
   0x5   :  { %2336 = vmatpush3.bf16.msra.mxu0 %v2333_v3 }
   0x6   :  { %13 = vsyncpa [#allocation3], 0  ;;  %v33_v6 = vld [vmem:[%s3173_s0 + $0x18] sm:$0xff]  ;;  %v34_v7 = vld [vmem:[%s3173_s0 + $0x20] sm:$0xff]  ;;  %vm457_vm1 = vcmask 523264   ;;  %vm1599_vm2 = vcmask 261120  }
   0x7   :  { %v35_v8 = vld [vmem:[%s3173_s0 + $0x28] sm:$0xff]  ;;  %v36_v9 = vld [vmem:[%s3173_s0 + $0x30] sm:$0xff]  ;;  %v37_v10 = vld [vmem:[%s3173_s0 + $0x38] sm:$0xff]  ;;  %s2542_s9 = smov 64   ;;  %s2543_s10 = smov 96   ;;  %vm1666_vm3 = vcmask 785408  }
   0x8   :  { %1982 = vmatmul.mubr.msk.f32.vlgmr.msra.gmra.mrb[0].mxu0 %vm71_vm0, %v31_v4  ;;  %v38_v11 = vld [vmem:[%s3173_s0 + $0x40] sm:$0xff]  ;;  %v39_v12 = vld [vmem:[%s3173_s0 + $0x48] sm:$0xff]  ;;  %v40_v13 = vld [vmem:[%s3173_s0 + $0x50] sm:$0xff]  ;;  %s2544_s11 = smov [#allocation2]  }
   0x9   :  { %1984 = vmatprep.mubr.msk.f32.mxu0 %vm71_vm0, %v32_v5  ;;  %v41_v14 = vld [vmem:[%s3173_s0 + $0x58] sm:$0xff]  ;;  %v42_v15 = vld [vmem:[%s3173_s0 + $0x60] sm:$0xff]  ;;  %v43_v16 = vld [vmem:[%s3173_s0 + $0x68] sm:$0xff]  ;;  %s1676_s12 = sshll.u32 %s2544_s11, 4  ;;  %s1677_s12 = int_to_ptr.vmem [resolvable:$true] %s1676_s12 }
   0xa   :  { %v44_v17 = vld [vmem:[%s3173_s0 + $0x70] sm:$0xff]  ;;  %v45_v18 = vld [vmem:[%s3173_s0 + $0x78] sm:$0xff]  ;;  %v2663_v19 = vld [vmem:[%s3174_s1] sm:$0xff]  ;;  %s2517_s13 = scalar_lea.vmem %s1677_s12, 16  ;;  %p2522_p1 = scmp.lt.s32.totalorder %s1677_s12, %s1677_s12 }
   0xb   :  { %2037 = vmatprep.mubr.f32.mxu1 %v2663_v19  ;;  %v281_v20 = vld [vmem:[%s3177_s4] sm:$0xff]  ;;  %v282_v21 = vld [vmem:[%s3177_s4 + $0x8] sm:$0xff]  ;;  %v283_v22 = vld [vmem:[%s3177_s4 + $0x10] sm:$0xff]  ;;  %p2518_p0 = scmp.ne.s32.totalorder %s1677_s12, %s2517_s13 }
   0xc   :  { %1985 = vmatmul.mubr.msk.f32.gmra.mrb[2].mxu0 %vm71_vm0, %v33_v6  ;;  %v2675_v23 = vpack.c.bf16 %v282_v21, %v281_v20  ;;  %v284_v24 = vld [vmem:[%s3177_s4 + $0x18] sm:$0xff]  ;;  %v285_v26 = vld [vmem:[%s3177_s4 + $0x20] sm:$0xff]  ;;  %v286_v27 = vld [vmem:[%s3177_s4 + $0x28] sm:$0xff] }
   0xd   :  { %1987 = vmatprep.mubr.msk.f32.mxu0 %vm71_vm0, %v34_v7  ;;  %v2680_v25 = vpack.c.bf16 %v284_v24, %v283_v22  ;;  %v2691_v28 = vpack.c.bf16 %v286_v27, %v285_v26  ;;  %v287_v29 = vld [vmem:[%s3177_s4 + $0x30] sm:$0xff]  ;;  %v288_v30 = vld [vmem:[%s3177_s4 + $0x38] sm:$0xff]  ;;  %v2710_v32 = vld [vmem:[%s3176_s3] ss:$0 sm:$0xff]  ;;  %s2521_s3 = scalar_lea.vmem %s1677_s12, 32 }
   0xe   :  { %2370 = vmatprep.subr.bf16.mxu0 %v2675_v23  ;;  %v2701_v31 = vpack.c.bf16 %v288_v30, %v287_v29  ;;  %v2779_v29 = vld [vmem:[%s3174_s1 + $0x8] sm:$0xff]  ;;  %v2784_v30 = vld [vmem:[%s3174_s1 + $0x10] sm:$0xff]  ;;  %p2523_p2 = scmp.lt.s32.totalorder %s2521_s3, %s2517_s13 }
   0xf   :  { %2372 = vmatpush3.bf16.msra.mxu0 %v2675_v23 }
  0x10   :  { %1988 = vmatmul.mubr.msk.f32.gmra.mrb[4].mxu0 %vm71_vm0, %v35_v8  ;;  %2374 = vmatprep.subr.bf16.mxu0 %v2680_v25  ;;  %p2524_p3 = por %p2523_p2, %p2522_p1 }
  0x11   :  { %1990 = vmatprep.mubr.msk.f32.mxu0 %vm71_vm0, %v36_v9 }
  0x12   :  { %p2525_p4 = pnand %p2524_p3, %p2518_p0 }
  0x13   :  { %2376 = vmatpush3.bf16.msra.mxu0 %v2680_v25 }
  0x14   :  { %1991 = vmatmul.mubr.msk.f32.gmra.mrb[6].mxu0 %vm71_vm0, %v37_v10  ;;  %2378 = vmatprep.subr.bf16.mxu0 %v2691_v28 }
  0x15   :  { %1993 = vmatprep.mubr.msk.f32.mxu0 %vm71_vm0, %v38_v11 }
  0x17   :  { %2380 = vmatpush3.bf16.msra.mxu0 %v2691_v28 }
  0x18   :  { %1994 = vmatmul.mubr.msk.f32.gmra.mrb[8].mxu0 %vm71_vm0, %v39_v12  ;;  %2382 = vmatprep.subr.bf16.mxu0 %v2701_v31 }
  0x19   :  { %1996 = vmatprep.mubr.msk.f32.mxu0 %vm71_vm0, %v40_v13 }
  0x1b   :  { %2384 = vmatpush3.bf16.msra.mxu0 %v2701_v31 }
  0x1c   :  { %1997 = vmatmul.mubr.msk.f32.gmra.mrb[10].mxu0 %vm71_vm0, %v41_v14  ;;  %2418 = vmatprep.subr.bf16.mxu0 %v2675_v23 }
  0x1d   :  { %1999 = vmatprep.mubr.msk.f32.mxu0 %vm71_vm0, %v42_v15 }
  0x20   :  { %2000 = vmatmul.mubr.msk.f32.gmra.mrb[12].mxu0 %vm71_vm0, %v43_v16 }
  0x21   :  { %2002 = vmatprep.mubr.msk.f32.mxu0 %vm71_vm0, %v44_v17 }
  0x24   :  { %2003 = vmatmul.mubr.msk.f32.gmra.mrb[14].mxu0 %vm71_vm0, %v45_v18 }
  0xdb   :  { %v1983_v33 = vpop.f32.mrb[0].mxu0 }
  0xdc   :  { %v2713_v34 = vadd.f32 %v1983_v33, %v2710_v32  ;;  %v186_v35 = vpop.f32.mrb[1].mxu0  ;;  %v2796_v33 = vld [vmem:[%s3174_s1 + $0x20] sm:$0xff] }
  0xdd   :  { %v2716_v36 = vadd.f32 %v2710_v32, %v186_v35  ;;  %v2803_v35 = vld [vmem:[%s3174_s1 + $0x28] sm:$0xff] }
  0xde   :  { %v266_v37 = vmax.f32 %v2713_v34, 0.0 }
  0xdf   :  { %v265_v38 = vmax.f32 %v2716_v36, 0.0  ;;  %v1986_v39 = vpop.f32.mrb[2].mxu0 }
  0xe0   :  { %v2721_v40 = vadd.f32 %v1986_v39, %v2710_v32  ;;  %v196_v41 = vpop.f32.mrb[3].mxu0  ;;  %v2820_v39 = vld [vmem:[%s3174_s1 + $0x40] sm:$0xff] }
  0xe1   :  { %v2724_v42 = vadd.f32 %v2710_v32, %v196_v41  ;;  %v2337_v43 = vpack.c.bf16 %v266_v37, %v265_v38  ;;  %v2808_v37 = vld [vmem:[%s3174_s1 + $0x30] sm:$0xff]  ;;  %v2815_v38 = vld [vmem:[%s3174_s1 + $0x38] sm:$0xff]  ;;  %v2827_v41 = vld [vmem:[%s3174_s1 + $0x48] sm:$0xff] }
  0xe2   :  { %v268_v44 = vmax.f32 %v2721_v40, 0.0 }
  0xe3   :  { %v267_v45 = vmax.f32 %v2724_v42, 0.0  ;;  %v1989_v46 = vpop.f32.mrb[4].mxu0  ;;  %2338 = vmatprep.subr.bf16.mxu1 %v2337_v43 }
  0xe4   :  { %v2729_v47 = vadd.f32 %v1989_v46, %v2710_v32  ;;  %v206_v48 = vpop.f32.mrb[5].mxu0  ;;  %2340 = vmatpush3.bf16.msra.mxu1 %v2337_v43  ;;  %v2832_v43 = vld [vmem:[%s3174_s1 + $0x50] sm:$0xff]  ;;  %v2851_v46 = vld [vmem:[%s3174_s1 + $0x68] sm:$0xff] }
  0xe5   :  { %v2732_v49 = vadd.f32 %v2710_v32, %v206_v48  ;;  %v2341_v50 = vpack.c.bf16 %v268_v44, %v267_v45  ;;  %v2839_v44 = vld [vmem:[%s3174_s1 + $0x58] sm:$0xff]  ;;  %v2844_v45 = vld [vmem:[%s3174_s1 + $0x60] sm:$0xff]  ;;  %v2856_v48 = vld [vmem:[%s3174_s1 + $0x70] sm:$0xff] }
  0xe6   :  { %v270_v51 = vmax.f32 %v2729_v47, 0.0 }
  0xe7   :  { %v269_v52 = vmax.f32 %v2732_v49, 0.0  ;;  %v1992_v53 = vpop.f32.mrb[6].mxu0  ;;  %2342 = vmatprep.subr.bf16.mxu1 %v2341_v50 }
  0xe8   :  { %v2737_v54 = vadd.f32 %v1992_v53, %v2710_v32  ;;  %v216_v55 = vpop.f32.mrb[7].mxu0  ;;  %2344 = vmatpush3.bf16.msra.mxu1 %v2341_v50  ;;  %v2863_v50 = vld [vmem:[%s3174_s1 + $0x78] sm:$0xff] }
  0xe9   :  { %v2740_v56 = vadd.f32 %v2710_v32, %v216_v55  ;;  %v2345_v57 = vpack.c.bf16 %v270_v51, %v269_v52 }
  0xea   :  { %v272_v58 = vmax.f32 %v2737_v54, 0.0 }
  0xeb   :  { %v271_v59 = vmax.f32 %v2740_v56, 0.0  ;;  %v1995_v60 = vpop.f32.mrb[8].mxu0  ;;  %2346 = vmatprep.subr.bf16.mxu1 %v2345_v57 }
  0xec   :  { %v2745_v61 = vadd.f32 %v1995_v60, %v2710_v32  ;;  %v226_v62 = vpop.f32.mrb[9].mxu0  ;;  %2348 = vmatpush3.bf16.msra.mxu1 %v2345_v57 }
  0xed   :  { %v2748_v63 = vadd.f32 %v2710_v32, %v226_v62  ;;  %v2349_v0 = vpack.c.bf16 %v272_v58, %v271_v59 }
  0xee   :  { %v274_v1 = vmax.f32 %v2745_v61, 0.0 }
  0xef   :  { %v273_v2 = vmax.f32 %v2748_v63, 0.0  ;;  %v1998_v3 = vpop.f32.mrb[10].mxu0  ;;  %2350 = vmatprep.subr.bf16.mxu1 %v2349_v0 }
  0xf0   :  { %v2753_v4 = vadd.f32 %v1998_v3, %v2710_v32  ;;  %v236_v5 = vpop.f32.mrb[11].mxu0  ;;  %2352 = vmatpush3.bf16.msra.mxu1 %v2349_v0 }
  0xf1   :  { %v2756_v6 = vadd.f32 %v2710_v32, %v236_v5  ;;  %v2353_v7 = vpack.c.bf16 %v274_v1, %v273_v2 }
  0xf2   :  { %v276_v8 = vmax.f32 %v2753_v4, 0.0 }
  0xf3   :  { %v275_v9 = vmax.f32 %v2756_v6, 0.0  ;;  %v2001_v10 = vpop.f32.mrb[12].mxu0  ;;  %2354 = vmatprep.subr.bf16.mxu1 %v2353_v7 }
  0xf4   :  { %v2761_v11 = vadd.f32 %v2001_v10, %v2710_v32  ;;  %v246_v12 = vpop.f32.mrb[13].mxu0  ;;  %2356 = vmatpush3.bf16.msra.mxu1 %v2353_v7 }
  0xf5   :  { %v2764_v13 = vadd.f32 %v2710_v32, %v246_v12  ;;  %v2357_v14 = vpack.c.bf16 %v276_v8, %v275_v9  ;;  %v2893_v9 = vld [vmem:[%s3178_s5] ss:$0 sm:$0xff] }
  0xf6   :  { %v278_v15 = vmax.f32 %v2761_v11, 0.0  ;;  %v2897_v10 = vadd.f32 %v2893_v9, %v2713_v34  ;;  %v2901_v12 = vadd.f32 %v2893_v9, %v2716_v36 }
  0xf7   :  { %v277_v16 = vmax.f32 %v2764_v13, 0.0  ;;  %v2004_v17 = vpop.f32.mrb[14].mxu0  ;;  %2358 = vmatprep.subr.bf16.mxu1 %v2357_v14 }
  0xf8   :  { %v2769_v18 = vadd.f32 %v2004_v17, %v2710_v32  ;;  %v256_v20 = vpop.f32.mrb[15].mxu0  ;;  %2360 = vmatpush3.bf16.msra.mxu1 %v2357_v14 }
  0xf9   :  { %v2772_v21 = vadd.f32 %v2710_v32, %v256_v20  ;;  %v2361_v22 = vpack.c.bf16 %v278_v15, %v277_v16  ;;  %v2791_v32 = vld [vmem:[%s3174_s1 + $0x18] sm:$0xff]  ;;  %v2907_v20 = vadd.f32 %v2893_v9, %v2721_v40  ;;  %v2921_v40 = vadd.f32 %v2893_v9, %v2732_v49 }
  0xfa   :  { %v280_v24 = vmax.f32 %v2769_v18, 0.0 }
  0xfb   :  { %v279_v26 = vmax.f32 %v2772_v21, 0.0  ;;  %2362 = vmatprep.subr.bf16.mxu1 %v2361_v22 }
  0xfc   :  { %2364 = vmatpush3.bf16.msra.mxu1 %v2361_v22 }
  0xfd   :  { %v2365_v27 = vpack.c.bf16 %v280_v24, %v279_v26  ;;  %v2911_v24 = vadd.f32 %v2893_v9, %v2724_v42 }
  0xff   :  { %2366 = vmatprep.subr.bf16.mxu1 %v2365_v27 }
 0x100   :  { %2368 = vmatpush3.bf16.msra.mxu1 %v2365_v27 }
 0x103   :  { %2038 = vmatmul.mubr.f32.vlgmr.msra.gmra.mrb[0].mxu1 %v2779_v29 }
 0x104   :  { %2040 = vmatprep.mubr.f32.mxu1 %v2784_v30 }
 0x107   :  { %2041 = vmatmul.mubr.f32.gmra.mrb[2].mxu1 %v2791_v32 }
 0x108   :  { %2043 = vmatprep.mubr.f32.mxu1 %v2796_v33 }
 0x10b   :  { %2044 = vmatmul.mubr.f32.gmra.mrb[4].mxu1 %v2803_v35 }
 0x10c   :  { %2046 = vmatprep.mubr.f32.mxu1 %v2808_v37 }
 0x10f   :  { %2047 = vmatmul.mubr.f32.gmra.mrb[6].mxu1 %v2815_v38 }
 0x110   :  { %2049 = vmatprep.mubr.f32.mxu1 %v2820_v39 }
 0x113   :  { %2050 = vmatmul.mubr.f32.gmra.mrb[8].mxu1 %v2827_v41 }
 0x114   :  { %2052 = vmatprep.mubr.f32.mxu1 %v2832_v43 }
 0x117   :  { %2053 = vmatmul.mubr.f32.gmra.mrb[10].mxu1 %v2839_v44 }
 0x118   :  { %2055 = vmatprep.mubr.f32.mxu1 %v2844_v45 }
 0x11b   :  { %2056 = vmatmul.mubr.f32.gmra.mrb[12].mxu1 %v2851_v46 }
 0x11c   :  { %2058 = vmatprep.mubr.f32.mxu1 %v2856_v48 }
 0x11f   :  { %2059 = vmatmul.mubr.f32.gmra.mrb[14].mxu1 %v2863_v50 }
 0x120   :  { %2133 = vmatprep.mubr.f32.mxu1 %v2663_v19 }
 0x1d6   :  { %v2039_v51 = vpop.f32.mrb[0].mxu1 }
 0x1d7   :  { %v378_v52 = vpop.f32.mrb[1].mxu1 }
 0x1d8   :  { %2077 = vmatprep.mubr.msk.f32.mxu0 %vm457_vm1, %v378_v52 }
 0x1d9   :  { %2078 = vmatmul.mubr.msk.f32.vlgmr.msra.gmra.mrb[16].mxu0 %vm457_vm1, %v2039_v51 }
 0x1da   :  { %v2042_v53 = vpop.f32.mrb[2].mxu1  ;;  %2420 = vmatpush3.bf16.msra.mxu0 %v2675_v23 }
 0x1db   :  { %v388_v55 = vpop.f32.mrb[3].mxu1  ;;  %2422 = vmatprep.subr.bf16.mxu0 %v2680_v25 }
 0x1dc   :  { %2080 = vmatprep.mubr.msk.f32.mxu0 %vm457_vm1, %v388_v55 }
 0x1dd   :  { %2081 = vmatmul.mubr.msk.f32.gmra.mrb[18].mxu0 %vm457_vm1, %v2042_v53  ;;  %v2917_v53 = vadd.f32 %v2893_v9, %v2729_v47 }
 0x1de   :  { %v2045_v57 = vpop.f32.mrb[4].mxu1  ;;  %2424 = vmatpush3.bf16.msra.mxu0 %v2680_v25 }
 0x1df   :  { %v398_v58 = vpop.f32.mrb[5].mxu1  ;;  %2426 = vmatprep.subr.bf16.mxu0 %v2691_v28 }
 0x1e0   :  { %2083 = vmatprep.mubr.msk.f32.mxu0 %vm457_vm1, %v398_v58 }
 0x1e1   :  { %2084 = vmatmul.mubr.msk.f32.gmra.mrb[20].mxu0 %vm457_vm1, %v2045_v57 }
 0x1e2   :  { %v2048_v59 = vpop.f32.mrb[6].mxu1  ;;  %2428 = vmatpush3.bf16.msra.mxu0 %v2691_v28 }
 0x1e3   :  { %v408_v60 = vpop.f32.mrb[7].mxu1  ;;  %2430 = vmatprep.subr.bf16.mxu0 %v2701_v31 }
 0x1e4   :  { %2086 = vmatprep.mubr.msk.f32.mxu0 %vm457_vm1, %v408_v60 }
 0x1e5   :  { %2087 = vmatmul.mubr.msk.f32.gmra.mrb[22].mxu0 %vm457_vm1, %v2048_v59 }
 0x1e6   :  { %v2051_v62 = vpop.f32.mrb[8].mxu1  ;;  %2432 = vmatpush3.bf16.msra.mxu0 %v2701_v31 }
 0x1e7   :  { %v418_v0 = vpop.f32.mrb[9].mxu1 }
 0x1e8   :  { %2089 = vmatprep.mubr.msk.f32.mxu0 %vm457_vm1, %v418_v0  ;;  %v2927_v0 = vadd.f32 %v2893_v9, %v2737_v54 }
 0x1e9   :  { %2090 = vmatmul.mubr.msk.f32.gmra.mrb[24].mxu0 %vm457_vm1, %v2051_v62 }
 0x1ea   :  { %v2054_v1 = vpop.f32.mrb[10].mxu1 }
 0x1eb   :  { %v428_v2 = vpop.f32.mrb[11].mxu1 }
 0x1ec   :  { %2092 = vmatprep.mubr.msk.f32.mxu0 %vm457_vm1, %v428_v2 }
 0x1ed   :  { %2093 = vmatmul.mubr.msk.f32.gmra.mrb[26].mxu0 %vm457_vm1, %v2054_v1  ;;  %v2931_v1 = vadd.f32 %v2893_v9, %v2740_v56 }
 0x1ee   :  { %v2057_v3 = vpop.f32.mrb[12].mxu1 }
 0x1ef   :  { %v438_v5 = vpop.f32.mrb[13].mxu1 }
 0x1f0   :  { %2095 = vmatprep.mubr.msk.f32.mxu0 %vm457_vm1, %v438_v5 }
 0x1f1   :  { %2096 = vmatmul.mubr.msk.f32.gmra.mrb[28].mxu0 %vm457_vm1, %v2057_v3 }
 0x1f2   :  { %v2060_v7 = vpop.f32.mrb[14].mxu1 }
 0x1f3   :  { %v448_v8 = vpop.f32.mrb[15].mxu1 }
 0x1f4   :  { %2098 = vmatprep.mubr.msk.f32.mxu0 %vm457_vm1, %v448_v8 }
 0x1f5   :  { %2099 = vmatmul.mubr.msk.f32.gmra.mrb[30].mxu0 %vm457_vm1, %v2060_v7 }
 0x2ac   :  { %v2079_v14 = vpop.f32.mrb[16].mxu0 }
 0x2ad   :  { %v578_v15 = vadd.f32 %v2079_v14, %v2897_v10  ;;  %v572_v16 = vpop.f32.mrb[17].mxu0  ;;  %v2937_v14 = vadd.f32 %v2893_v9, %v2745_v61 }
 0x2ae   :  { %v573_v17 = vadd.f32 %v572_v16, %v2901_v12 }
 0x2af   :  { %v652_v22 = vmax.f32 %v578_v15, 0.0  ;;  %v2941_v15 = vadd.f32 %v2893_v9, %v2748_v63 }
 0x2b0   :  { %v651_v34 = vmax.f32 %v573_v17, 0.0  ;;  %v2082_v26 = vpop.f32.mrb[18].mxu0 }
 0x2b1   :  { %v588_v36 = vadd.f32 %v2082_v26, %v2907_v20  ;;  %v582_v27 = vpop.f32.mrb[19].mxu0 }
 0x2b2   :  { %v2385_v51 = vpack.c.bf16 %v652_v22, %v651_v34  ;;  %v583_v52 = vadd.f32 %v582_v27, %v2911_v24  ;;  %v2951_v27 = vadd.f32 %v2893_v9, %v2756_v6 }
 0x2b3   :  { %v654_v55 = vmax.f32 %v588_v36, 0.0  ;;  %v2947_v36 = vadd.f32 %v2893_v9, %v2753_v4 }
 0x2b4   :  { %v653_v57 = vmax.f32 %v583_v52, 0.0  ;;  %v2085_v42 = vpop.f32.mrb[20].mxu0  ;;  %2386 = vmatprep.subr.bf16.mxu1 %v2385_v51 }
 0x2b5   :  { %v598_v58 = vadd.f32 %v2085_v42, %v2917_v53  ;;  %v592_v59 = vpop.f32.mrb[21].mxu0  ;;  %2388 = vmatpush3.bf16.msra.mxu1 %v2385_v51 }
 0x2b6   :  { %v2389_v60 = vpack.c.bf16 %v654_v55, %v653_v57  ;;  %v593_v62 = vadd.f32 %v592_v59, %v2921_v40  ;;  %v2961_v59 = vadd.f32 %v2893_v9, %v2764_v13 }
 0x2b7   :  { %v656_v47 = vmax.f32 %v598_v58, 0.0  ;;  %v2957_v58 = vadd.f32 %v2893_v9, %v2761_v11 }
 0x2b8   :  { %v655_v49 = vmax.f32 %v593_v62, 0.0  ;;  %v2088_v2 = vpop.f32.mrb[22].mxu0  ;;  %2390 = vmatprep.subr.bf16.mxu1 %v2389_v60 }
 0x2b9   :  { %v608_v3 = vadd.f32 %v2088_v2, %v2927_v0  ;;  %v602_v5 = vpop.f32.mrb[23].mxu0  ;;  %2392 = vmatpush3.bf16.msra.mxu1 %v2389_v60 }
 0x2ba   :  { %v2393_v7 = vpack.c.bf16 %v656_v47, %v655_v49  ;;  %v603_v8 = vadd.f32 %v602_v5, %v2931_v1  ;;  %v2971_v5 = vadd.f32 %v2893_v9, %v2772_v21 }
 0x2bb   :  { %v658_v54 = vmax.f32 %v608_v3, 0.0  ;;  %v2967_v3 = vadd.f32 %v2893_v9, %v2769_v18 }
 0x2bc   :  { %v657_v56 = vmax.f32 %v603_v8, 0.0  ;;  %v2091_v16 = vpop.f32.mrb[24].mxu0  ;;  %2394 = vmatprep.subr.bf16.mxu1 %v2393_v7 }
 0x2bd   :  { %v618_v17 = vadd.f32 %v2091_v16, %v2937_v14  ;;  %v612_v22 = vpop.f32.mrb[25].mxu0  ;;  %2396 = vmatpush3.bf16.msra.mxu1 %v2393_v7 }
 0x2be   :  { %v2397_v34 = vpack.c.bf16 %v658_v54, %v657_v56  ;;  %v613_v26 = vadd.f32 %v612_v22, %v2941_v15 }
 0x2bf   :  { %v660_v61 = vmax.f32 %v618_v17, 0.0 }
 0x2c0   :  { %v659_v63 = vmax.f32 %v613_v26, 0.0  ;;  %v2094_v51 = vpop.f32.mrb[26].mxu0  ;;  %2398 = vmatprep.subr.bf16.mxu1 %v2397_v34 }
 0x2c1   :  { %v628_v52 = vadd.f32 %v2094_v51, %v2947_v36  ;;  %v622_v55 = vpop.f32.mrb[27].mxu0  ;;  %2400 = vmatpush3.bf16.msra.mxu1 %v2397_v34 }
 0x2c2   :  { %v2401_v57 = vpack.c.bf16 %v660_v61, %v659_v63  ;;  %v623_v42 = vadd.f32 %v622_v55, %v2951_v27 }
 0x2c3   :  { %v662_v4 = vmax.f32 %v628_v52, 0.0 }
 0x2c4   :  { %v661_v6 = vmax.f32 %v623_v42, 0.0  ;;  %v2097_v60 = vpop.f32.mrb[28].mxu0  ;;  %2402 = vmatprep.subr.bf16.mxu1 %v2401_v57 }
 0x2c5   :  { %v638_v62 = vadd.f32 %v2097_v60, %v2957_v58  ;;  %v632_v47 = vpop.f32.mrb[29].mxu0  ;;  %2404 = vmatpush3.bf16.msra.mxu1 %v2401_v57 }
 0x2c6   :  { %v2405_v49 = vpack.c.bf16 %v662_v4, %v661_v6  ;;  %v633_v2 = vadd.f32 %v632_v47, %v2961_v59 }
 0x2c7   :  { %v664_v11 = vmax.f32 %v638_v62, 0.0 }
 0x2c8   :  { %v663_v13 = vmax.f32 %v633_v2, 0.0  ;;  %v2100_v7 = vpop.f32.mrb[30].mxu0  ;;  %2406 = vmatprep.subr.bf16.mxu1 %v2405_v49 }
 0x2c9   :  { %v648_v8 = vadd.f32 %v2100_v7, %v2967_v3  ;;  %v642_v54 = vpop.f32.mrb[31].mxu0  ;;  %2408 = vmatpush3.bf16.msra.mxu1 %v2405_v49 }
 0x2ca   :  { %v2409_v56 = vpack.c.bf16 %v664_v11, %v663_v13  ;;  %v643_v16 = vadd.f32 %v642_v54, %v2971_v5 }
 0x2cb   :  { %v666_v17 = vmax.f32 %v648_v8, 0.0 }
 0x2cc   :  { %v665_v22 = vmax.f32 %v643_v16, 0.0  ;;  %2410 = vmatprep.subr.bf16.mxu1 %v2409_v56 }
 0x2cd   :  { %2412 = vmatpush3.bf16.msra.mxu1 %v2409_v56 }
 0x2ce   :  { %v2413_v18 = vpack.c.bf16 %v666_v17, %v665_v22 }
 0x2d0   :  { %2414 = vmatprep.subr.bf16.mxu1 %v2413_v18 }
 0x2d1   :  { %2416 = vmatpush3.bf16.msra.mxu1 %v2413_v18 }
 0x2d4   :  { %2134 = vmatmul.mubr.f32.vlgmr.msra.gmra.mrb[16].mxu1 %v2779_v29 }
 0x2d5   :  { %2136 = vmatprep.mubr.f32.mxu1 %v2784_v30 }
 0x2d8   :  { %2137 = vmatmul.mubr.f32.gmra.mrb[18].mxu1 %v2791_v32 }
 0x2d9   :  { %2139 = vmatprep.mubr.f32.mxu1 %v2796_v33 }
 0x2dc   :  { %2140 = vmatmul.mubr.f32.gmra.mrb[20].mxu1 %v2803_v35 }
 0x2dd   :  { %2142 = vmatprep.mubr.f32.mxu1 %v2808_v37 }
 0x2e0   :  { %2143 = vmatmul.mubr.f32.gmra.mrb[22].mxu1 %v2815_v38 }
 0x2e1   :  { %2145 = vmatprep.mubr.f32.mxu1 %v2820_v39 }
 0x2e4   :  { %2146 = vmatmul.mubr.f32.gmra.mrb[24].mxu1 %v2827_v41 }
 0x2e5   :  { %2148 = vmatprep.mubr.f32.mxu1 %v2832_v43 }
 0x2e8   :  { %2149 = vmatmul.mubr.f32.gmra.mrb[26].mxu1 %v2839_v44 }
 0x2e9   :  { %2151 = vmatprep.mubr.f32.mxu1 %v2844_v45 }
 0x2ec   :  { %2152 = vmatmul.mubr.f32.gmra.mrb[28].mxu1 %v2851_v46 }
 0x2ed   :  { %2154 = vmatprep.mubr.f32.mxu1 %v2856_v48 }
 0x2f0   :  { %2155 = vmatmul.mubr.f32.gmra.mrb[30].mxu1 %v2863_v50 }
 0x2f1   :  { %2241 = vmatprep.mubr.f32.mxu1 %v2820_v39 }
 0x3a7   :  { %v2135_v21 = vpop.f32.mrb[16].mxu1 }
 0x3a8   :  { %v733_v9 = vpop.f32.mrb[17].mxu1 }
 0x3a9   :  { %2173 = vmatprep.mubr.msk.f32.mxu0 %vm457_vm1, %v733_v9 }
 0x3aa   :  { %2174 = vmatmul.mubr.msk.f32.vlgmr.msra.gmra.mrb[32].mxu0 %vm457_vm1, %v2135_v21 }
 0x3ab   :  { %v2138_v34 = vpop.f32.mrb[18].mxu1 }
 0x3ac   :  { %v743_v26 = vpop.f32.mrb[19].mxu1 }
 0x3ad   :  { %2176 = vmatprep.mubr.msk.f32.mxu0 %vm457_vm1, %v743_v26 }
 0x3ae   :  { %2177 = vmatmul.mubr.msk.f32.gmra.mrb[34].mxu0 %vm457_vm1, %v2138_v34 }
 0x3af   :  { %v2141_v61 = vpop.f32.mrb[20].mxu1 }
 0x3b0   :  { %v753_v63 = vpop.f32.mrb[21].mxu1 }
 0x3b1   :  { %2179 = vmatprep.mubr.msk.f32.mxu0 %vm457_vm1, %v753_v63 }
 0x3b2   :  { %2180 = vmatmul.mubr.msk.f32.gmra.mrb[36].mxu0 %vm457_vm1, %v2141_v61 }
 0x3b3   :  { %v2144_v51 = vpop.f32.mrb[22].mxu1 }
 0x3b4   :  { %v763_v39 = vpop.f32.mrb[23].mxu1 }
 0x3b5   :  { %2182 = vmatprep.mubr.msk.f32.mxu0 %vm457_vm1, %v763_v39 }
 0x3b6   :  { %2183 = vmatmul.mubr.msk.f32.gmra.mrb[38].mxu0 %vm457_vm1, %v2144_v51 }
 0x3b7   :  { %v2147_v52 = vpop.f32.mrb[24].mxu1 }
 0x3b8   :  { %v773_v55 = vpop.f32.mrb[25].mxu1 }
 0x3b9   :  { %2185 = vmatprep.mubr.msk.f32.mxu0 %vm457_vm1, %v773_v55 }
 0x3ba   :  { %2186 = vmatmul.mubr.msk.f32.gmra.mrb[40].mxu0 %vm457_vm1, %v2147_v52 }
 0x3bb   :  { %v2150_v57 = vpop.f32.mrb[26].mxu1 }
 0x3bc   :  { %v783_v42 = vpop.f32.mrb[27].mxu1 }
 0x3bd   :  { %2188 = vmatprep.mubr.msk.f32.mxu0 %vm457_vm1, %v783_v42 }
 0x3be   :  { %2189 = vmatmul.mubr.msk.f32.gmra.mrb[42].mxu0 %vm457_vm1, %v2150_v57 }
 0x3bf   :  { %v2153_v4 = vpop.f32.mrb[28].mxu1 }
 0x3c0   :  { %v793_v6 = vpop.f32.mrb[29].mxu1 }
 0x3c1   :  { %2191 = vmatprep.mubr.msk.f32.mxu0 %vm457_vm1, %v793_v6 }
 0x3c2   :  { %2192 = vmatmul.mubr.msk.f32.gmra.mrb[44].mxu0 %vm457_vm1, %v2153_v4 }
 0x3c3   :  { %v2156_v60 = vpop.f32.mrb[30].mxu1 }
 0x3c4   :  { %v803_v62 = vpop.f32.mrb[31].mxu1 }
 0x3c5   :  { %2194 = vmatprep.mubr.msk.f32.mxu0 %vm457_vm1, %v803_v62 }
 0x3c6   :  { %2195 = vmatmul.mubr.msk.f32.gmra.mrb[46].mxu0 %vm457_vm1, %v2156_v60 }
 0x3c7   :  { %2229 = vmatprep.mubr.f32.mxu0 %v2663_v19 }
 0x47d   :  { %v2175_v47 = vpop.f32.mrb[32].mxu0 }
 0x47e   :  { %v932_v49 = vadd.f32 %v2175_v47, %v2897_v10  ;;  %v926_v2 = vpop.f32.mrb[33].mxu0 }
 0x47f   :  { %v927_v11 = vadd.f32 %v926_v2, %v2901_v12 }
 0x480   :  { %v1006_v13 = vmax.f32 %v932_v49, 0.0 }
 0x481   :  { %v1005_v7 = vmax.f32 %v927_v11, 0.0  ;;  %v2178_v8 = vpop.f32.mrb[34].mxu0 }
 0x482   :  { %v942_v54 = vadd.f32 %v2178_v8, %v2907_v20  ;;  %v936_v56 = vpop.f32.mrb[35].mxu0 }
 0x483   :  { %v2433_v16 = vpack.c.bf16 %v1006_v13, %v1005_v7  ;;  %v937_v17 = vadd.f32 %v936_v56, %v2911_v24 }
 0x484   :  { %v1008_v22 = vmax.f32 %v942_v54, 0.0 }
 0x485   :  { %v1007_v18 = vmax.f32 %v937_v17, 0.0  ;;  %v2181_v21 = vpop.f32.mrb[36].mxu0  ;;  %2434 = vmatprep.subr.bf16.mxu0 %v2433_v16  ;;  %2497 = vmatprep.subr.bf16.mxu1 %v2433_v16 }
 0x486   :  { %v952_v19 = vadd.f32 %v2181_v21, %v2917_v53  ;;  %v946_v9 = vpop.f32.mrb[37].mxu0  ;;  %2436 = vmatpush3.bf16.msra.mxu0 %v2433_v16  ;;  %2505 = vmatpush3.bf16.msra.mxu1 %v2433_v16 }
 0x487   :  { %v2437_v34 = vpack.c.bf16 %v1008_v22, %v1007_v18  ;;  %v947_v26 = vadd.f32 %v946_v9, %v2921_v40 }
 0x488   :  { %v1010_v61 = vmax.f32 %v952_v19, 0.0 }
 0x489   :  { %v1009_v63 = vmax.f32 %v947_v26, 0.0  ;;  %v2184_v51 = vpop.f32.mrb[38].mxu0  ;;  %2438 = vmatprep.subr.bf16.mxu0 %v2437_v34  ;;  %2498 = vmatprep.subr.bf16.mxu1 %v2437_v34 }
 0x48a   :  { %v962_v39 = vadd.f32 %v2184_v51, %v2927_v0  ;;  %v956_v52 = vpop.f32.mrb[39].mxu0  ;;  %2440 = vmatpush3.bf16.msra.mxu0 %v2437_v34  ;;  %2506 = vmatpush3.bf16.msra.mxu1 %v2437_v34 }
 0x48b   :  { %v2441_v55 = vpack.c.bf16 %v1010_v61, %v1009_v63  ;;  %v957_v57 = vadd.f32 %v956_v52, %v2931_v1 }
 0x48c   :  { %v1012_v42 = vmax.f32 %v962_v39, 0.0 }
 0x48d   :  { %v1011_v4 = vmax.f32 %v957_v57, 0.0  ;;  %v2187_v6 = vpop.f32.mrb[40].mxu0  ;;  %2442 = vmatprep.subr.bf16.mxu0 %v2441_v55  ;;  %2499 = vmatprep.subr.bf16.mxu1 %v2441_v55 }
 0x48e   :  { %v972_v60 = vadd.f32 %v2187_v6, %v2937_v14  ;;  %v966_v62 = vpop.f32.mrb[41].mxu0  ;;  %2444 = vmatpush3.bf16.msra.mxu0 %v2441_v55  ;;  %2507 = vmatpush3.bf16.msra.mxu1 %v2441_v55 }
 0x48f   :  { %v2445_v47 = vpack.c.bf16 %v1012_v42, %v1011_v4  ;;  %v967_v49 = vadd.f32 %v966_v62, %v2941_v15 }
 0x490   :  { %v1014_v2 = vmax.f32 %v972_v60, 0.0 }
 0x491   :  { %v1013_v11 = vmax.f32 %v967_v49, 0.0  ;;  %v2190_v13 = vpop.f32.mrb[42].mxu0  ;;  %2446 = vmatprep.subr.bf16.mxu0 %v2445_v47  ;;  %2500 = vmatprep.subr.bf16.mxu1 %v2445_v47 }
 0x492   :  { %v982_v7 = vadd.f32 %v2190_v13, %v2947_v36  ;;  %v976_v8 = vpop.f32.mrb[43].mxu0  ;;  %2448 = vmatpush3.bf16.msra.mxu0 %v2445_v47  ;;  %2508 = vmatpush3.bf16.msra.mxu1 %v2445_v47  ;;  %v1382_v13 = vld [vmem:[%s3179_s6 + $0x38] sm:$0xff] }
 0x493   :  { %v2449_v54 = vpack.c.bf16 %v1014_v2, %v1013_v11  ;;  %v977_v56 = vadd.f32 %v976_v8, %v2951_v27  ;;  %v1381_v11 = vld [vmem:[%s3179_s6 + $0x30] sm:$0xff] }
 0x494   :  { %v1016_v16 = vmax.f32 %v982_v7, 0.0  ;;  %v2493_v7 = vpack.c.bf16 %v1382_v13, %v1381_v11 }
 0x495   :  { %v1015_v17 = vmax.f32 %v977_v56, 0.0  ;;  %v2193_v22 = vpop.f32.mrb[44].mxu0  ;;  %2450 = vmatprep.subr.bf16.mxu0 %v2449_v54  ;;  %2501 = vmatprep.subr.bf16.mxu1 %v2449_v54 }
 0x496   :  { %v992_v18 = vadd.f32 %v2193_v22, %v2957_v58  ;;  %v986_v21 = vpop.f32.mrb[45].mxu0  ;;  %2452 = vmatpush3.bf16.msra.mxu0 %v2449_v54  ;;  %2509 = vmatpush3.bf16.msra.mxu1 %v2449_v54 }
 0x497   :  { %v2453_v19 = vpack.c.bf16 %v1016_v16, %v1015_v17  ;;  %v987_v9 = vadd.f32 %v986_v21, %v2961_v59 }
 0x498   :  { %v1018_v34 = vmax.f32 %v992_v18, 0.0 }
 0x499   :  { %v1017_v26 = vmax.f32 %v987_v9, 0.0  ;;  %v2196_v61 = vpop.f32.mrb[46].mxu0  ;;  %2454 = vmatprep.subr.bf16.mxu0 %v2453_v19  ;;  %2502 = vmatprep.subr.bf16.mxu1 %v2453_v19 }
 0x49a   :  { %v1002_v63 = vadd.f32 %v2196_v61, %v2967_v3  ;;  %v996_v51 = vpop.f32.mrb[47].mxu0  ;;  %2456 = vmatpush3.bf16.msra.mxu0 %v2453_v19  ;;  %2510 = vmatpush3.bf16.msra.mxu1 %v2453_v19 }
 0x49b   :  { %v2457_v39 = vpack.c.bf16 %v1018_v34, %v1017_v26  ;;  %v997_v52 = vadd.f32 %v996_v51, %v2971_v5 }
 0x49c   :  { %v1020_v55 = vmax.f32 %v1002_v63, 0.0 }
 0x49d   :  { %v1019_v57 = vmax.f32 %v997_v52, 0.0  ;;  %2458 = vmatprep.subr.bf16.mxu0 %v2457_v39  ;;  %2503 = vmatprep.subr.bf16.mxu1 %v2457_v39 }
 0x49e   :  { %2460 = vmatpush3.bf16.msra.mxu0 %v2457_v39  ;;  %2511 = vmatpush3.bf16.msra.mxu1 %v2457_v39 }
 0x49f   :  { %v2461_v42 = vpack.c.bf16 %v1020_v55, %v1019_v57 }
 0x4a1   :  { %2462 = vmatprep.subr.bf16.mxu0 %v2461_v42  ;;  %2504 = vmatprep.subr.bf16.mxu1 %v2461_v42 }
 0x4a2   :  { %2464 = vmatpush3.bf16.msra.mxu0 %v2461_v42  ;;  %2512 = vmatpush3.bf16.msra.mxu1 %v2461_v42 }
 0x4a3   :  { %2466 = vmatprep.subr.bf16.mxu0 %v2675_v23 }
 0x4a5   :  { %2230 = vmatmul.mubr.f32.vlgmr.msra.gmra.mrb[48].mxu0 %v2779_v29  ;;  %2242 = vmatmul.mubr.f32.vlgmr.msra.gmra.mrb[32].mxu1 %v2827_v41 }
 0x4a6   :  { %2232 = vmatprep.mubr.f32.mxu0 %v2784_v30  ;;  %2244 = vmatprep.mubr.f32.mxu1 %v2832_v43  ;;  %v1378_v30 = vld [vmem:[%s3179_s6 + $0x18] sm:$0xff] }
 0x4a7   :  { %2468 = vmatpush3.bf16.msra.mxu0 %v2675_v23  ;;  %v1375_v23 = vld [vmem:[%s3179_s6] sm:$0xff] }
 0x4a8   :  { %2470 = vmatprep.subr.bf16.mxu0 %v2680_v25 }
 0x4a9   :  { %2233 = vmatmul.mubr.f32.gmra.mrb[50].mxu0 %v2791_v32  ;;  %2245 = vmatmul.mubr.f32.gmra.mrb[34].mxu1 %v2839_v44 }
 0x4aa   :  { %2235 = vmatprep.mubr.f32.mxu0 %v2796_v33  ;;  %2247 = vmatprep.mubr.f32.mxu1 %v2844_v45  ;;  %v1380_v33 = vld [vmem:[%s3179_s6 + $0x28] sm:$0xff] }
 0x4ab   :  { %2472 = vmatpush3.bf16.msra.mxu0 %v2680_v25  ;;  %v1376_v25 = vld [vmem:[%s3179_s6 + $0x8] sm:$0xff] }
 0x4ac   :  { %2474 = vmatprep.subr.bf16.mxu0 %v2691_v28  ;;  %v2481_v29 = vpack.c.bf16 %v1376_v25, %v1375_v23 }
 0x4ad   :  { %2236 = vmatmul.mubr.f32.gmra.mrb[52].mxu0 %v2803_v35  ;;  %2248 = vmatmul.mubr.f32.gmra.mrb[36].mxu1 %v2851_v46 }
 0x4ae   :  { %2238 = vmatprep.mubr.f32.mxu0 %v2808_v37  ;;  %2250 = vmatprep.mubr.f32.mxu1 %v2856_v48 }
 0x4af   :  { %2476 = vmatpush3.bf16.msra.mxu0 %v2691_v28  ;;  %v1377_v28 = vld [vmem:[%s3179_s6 + $0x10] sm:$0xff]  ;;  %2482 = vmatprep.subr.bf16.mxu1 %v2481_v29 }
 0x4b0   :  { %2478 = vmatprep.subr.bf16.mxu0 %v2701_v31  ;;  %v2485_v32 = vpack.c.bf16 %v1378_v30, %v1377_v28  ;;  %2484 = vmatpush3.bf16.msra.mxu1 %v2481_v29 }
 0x4b1   :  { %2239 = vmatmul.mubr.f32.gmra.mrb[54].mxu0 %v2815_v38  ;;  %2251 = vmatmul.mubr.f32.gmra.mrb[38].mxu1 %v2863_v50 }
 0x4b2   :  { %2486 = vmatprep.subr.bf16.mxu1 %v2485_v32 }
 0x4b3   :  { %2480 = vmatpush3.bf16.msra.mxu0 %v2701_v31  ;;  %v1379_v31 = vld [vmem:[%s3179_s6 + $0x20] sm:$0xff] }
 0x4b4   :  { %v2489_v35 = vpack.c.bf16 %v1380_v33, %v1379_v31  ;;  %2488 = vmatpush3.bf16.msra.mxu1 %v2485_v32 }
 0x4b6   :  { %2490 = vmatprep.subr.bf16.mxu1 %v2489_v35 }
 0x4b8   :  { %2492 = vmatpush3.bf16.msra.mxu1 %v2489_v35 }
 0x4b9   :  { %2494 = vmatprep.subr.bf16.mxu1 %v2493_v7 }
 0x4bc   :  { %2496 = vmatpush3.bf16.msra.mxu1 %v2493_v7 }
 0x578   :  { %v2231_v37 = vpop.f32.mrb[48].mxu0  ;;  %v2243_v38 = vpop.f32.mrb[32].mxu1 }
 0x579   :  { %v1087_v41 = vpop.f32.mrb[49].mxu0  ;;  %v1127_v43 = vpop.f32.mrb[33].mxu1 }
 0x57a   :  { %2269 = vmatprep.mubr.msk.f32.mxu0 %vm457_vm1, %v1087_v41 }
 0x57b   :  { %2270 = vmatmul.mubr.msk.f32.vlgmr.msra.gmra.mrb[56].mxu0 %vm457_vm1, %v2231_v37 }
 0x57c   :  { %v2234_v44 = vpop.f32.mrb[50].mxu0  ;;  %v2246_v45 = vpop.f32.mrb[34].mxu1 }
 0x57d   :  { %v1097_v46 = vpop.f32.mrb[51].mxu0  ;;  %v1137_v48 = vpop.f32.mrb[35].mxu1 }
 0x57e   :  { %2272 = vmatprep.mubr.msk.f32.mxu0 %vm457_vm1, %v1097_v46 }
 0x57f   :  { %2273 = vmatmul.mubr.msk.f32.gmra.mrb[58].mxu0 %vm457_vm1, %v2234_v44 }
 0x580   :  { %v2237_v50 = vpop.f32.mrb[52].mxu0  ;;  %v2249_v4 = vpop.f32.mrb[36].mxu1 }
 0x581   :  { %v1107_v6 = vpop.f32.mrb[53].mxu0  ;;  %v1147_v60 = vpop.f32.mrb[37].mxu1 }
 0x582   :  { %2275 = vmatprep.mubr.msk.f32.mxu0 %vm457_vm1, %v1107_v6 }
 0x583   :  { %2276 = vmatmul.mubr.msk.f32.gmra.mrb[60].mxu0 %vm457_vm1, %v2237_v50 }
 0x584   :  { %v2240_v62 = vpop.f32.mrb[54].mxu0  ;;  %v2252_v47 = vpop.f32.mrb[38].mxu1 }
 0x585   :  { %v1117_v49 = vpop.f32.mrb[55].mxu0  ;;  %v1157_v2 = vpop.f32.mrb[39].mxu1 }
 0x586   :  { %2278 = vmatprep.mubr.msk.f32.mxu0 %vm457_vm1, %v1117_v49 }
 0x587   :  { %2279 = vmatmul.mubr.msk.f32.gmra.mrb[62].mxu0 %vm457_vm1, %v2240_v62 }
 0x588   :  { %2281 = vmatprep.mubr.msk.f32.mxu0 %vm457_vm1, %v1127_v43 }
 0x58b   :  { %2282 = vmatmul.mubr.msk.f32.gmra.mrb[64].mxu0 %vm457_vm1, %v2243_v38 }
 0x58c   :  { %2284 = vmatprep.mubr.msk.f32.mxu0 %vm457_vm1, %v1137_v48 }
 0x58f   :  { %2285 = vmatmul.mubr.msk.f32.gmra.mrb[66].mxu0 %vm457_vm1, %v2246_v45 }
 0x590   :  { %2287 = vmatprep.mubr.msk.f32.mxu0 %vm457_vm1, %v1147_v60 }
 0x593   :  { %2288 = vmatmul.mubr.msk.f32.gmra.mrb[68].mxu0 %vm457_vm1, %v2249_v4 }
 0x594   :  { %2290 = vmatprep.mubr.msk.f32.mxu0 %vm457_vm1, %v1157_v2 }
 0x597   :  { %2291 = vmatmul.mubr.msk.f32.gmra.mrb[70].mxu0 %vm457_vm1, %v2252_v47 }
 0x64e   :  { %v2271_v8 = vpop.f32.mrb[56].mxu0 }
 0x64f   :  { %v1286_v54 = vadd.f32 %v2271_v8, %v2897_v10  ;;  %v1280_v56 = vpop.f32.mrb[57].mxu0 }
 0x650   :  { %v1281_v16 = vadd.f32 %v1280_v56, %v2901_v12 }
 0x651   :  { %v1360_v18 = vmax.f32 %v1286_v54, 0.0 }
 0x652   :  { %v1359_v17 = vmax.f32 %v1281_v16, 0.0  ;;  %v2274_v22 = vpop.f32.mrb[58].mxu0 }
 0x653   :  { %v1296_v21 = vadd.f32 %v2274_v22, %v2907_v20  ;;  %v1290_v19 = vpop.f32.mrb[59].mxu0 }
 0x654   :  { %v1291_v9 = vadd.f32 %v1290_v19, %v2911_v24  ;;  %2309 = vmatprep.mubr.msk.f32.mxu1 %vm457_vm1, %v1359_v17 }
 0x655   :  { %2310 = vmatmul.mubr.msk.f32.vlgmr.msra.gmra.mrb[40].mxu1 %vm457_vm1, %v1360_v18  ;;  %v1362_v61 = vmax.f32 %v1296_v21, 0.0 }
 0x656   :  { %v1361_v34 = vmax.f32 %v1291_v9, 0.0  ;;  %v2277_v26 = vpop.f32.mrb[60].mxu0 }
 0x657   :  { %v1306_v10 = vadd.f32 %v2277_v26, %v2917_v53  ;;  %v1300_v63 = vpop.f32.mrb[61].mxu0 }
 0x658   :  { %v1301_v12 = vadd.f32 %v1300_v63, %v2921_v40  ;;  %2312 = vmatprep.mubr.msk.f32.mxu1 %vm457_vm1, %v1361_v34 }
 0x659   :  { %2313 = vmatmul.mubr.msk.f32.gmra.mrb[42].mxu1 %vm457_vm1, %v1362_v61  ;;  %v1364_v39 = vmax.f32 %v1306_v10, 0.0 }
 0x65a   :  { %v1363_v20 = vmax.f32 %v1301_v12, 0.0  ;;  %v2280_v51 = vpop.f32.mrb[62].mxu0 }
 0x65b   :  { %v1316_v24 = vadd.f32 %v2280_v51, %v2927_v0  ;;  %v1310_v52 = vpop.f32.mrb[63].mxu0 }
 0x65c   :  { %v1311_v55 = vadd.f32 %v1310_v52, %v2931_v1  ;;  %2315 = vmatprep.mubr.msk.f32.mxu1 %vm457_vm1, %v1363_v20 }
 0x65d   :  { %2316 = vmatmul.mubr.msk.f32.gmra.mrb[44].mxu1 %vm457_vm1, %v1364_v39  ;;  %v1366_v42 = vmax.f32 %v1316_v24, 0.0 }
 0x65e   :  { %v1365_v53 = vmax.f32 %v1311_v55, 0.0  ;;  %v2283_v57 = vpop.f32.mrb[64].mxu0 }
 0x65f   :  { %v1326_v40 = vadd.f32 %v2283_v57, %v2937_v14  ;;  %v1320_v23 = vpop.f32.mrb[65].mxu0 }
 0x660   :  { %v1321_v25 = vadd.f32 %v1320_v23, %v2941_v15  ;;  %2318 = vmatprep.mubr.msk.f32.mxu1 %vm457_vm1, %v1365_v53 }
 0x661   :  { %2319 = vmatmul.mubr.msk.f32.gmra.mrb[46].mxu1 %vm457_vm1, %v1366_v42  ;;  %v1368_v29 = vmax.f32 %v1326_v40, 0.0 }
 0x662   :  { %v1367_v0 = vmax.f32 %v1321_v25, 0.0  ;;  %v2286_v28 = vpop.f32.mrb[66].mxu0 }
 0x663   :  { %v1336_v1 = vadd.f32 %v2286_v28, %v2947_v36  ;;  %v1330_v30 = vpop.f32.mrb[67].mxu0 }
 0x664   :  { %v1331_v32 = vadd.f32 %v1330_v30, %v2951_v27  ;;  %2321 = vmatprep.mubr.msk.f32.mxu1 %vm457_vm1, %v1367_v0 }
 0x665   :  { %2322 = vmatmul.mubr.msk.f32.gmra.mrb[48].mxu1 %vm457_vm1, %v1368_v29  ;;  %v1370_v33 = vmax.f32 %v1336_v1, 0.0 }
 0x666   :  { %v1369_v14 = vmax.f32 %v1331_v32, 0.0  ;;  %v2289_v31 = vpop.f32.mrb[68].mxu0 }
 0x667   :  { %v1346_v15 = vadd.f32 %v2289_v31, %v2957_v58  ;;  %v1340_v35 = vpop.f32.mrb[69].mxu0 }
 0x668   :  { %v1341_v37 = vadd.f32 %v1340_v35, %v2961_v59  ;;  %2324 = vmatprep.mubr.msk.f32.mxu1 %vm457_vm1, %v1369_v14  ;;  %v3121_v59 = vld [vmem:[%s3180_s7] ss:$0 sm:$0xff]  ;;  %s2541_s7 = smov 32  }
 0x669   :  { %2325 = vmatmul.mubr.msk.f32.gmra.mrb[50].mxu1 %vm457_vm1, %v1370_v33  ;;  %v1372_v41 = vmax.f32 %v1346_v15, 0.0 }
 0x66a   :  { %v1371_v36 = vmax.f32 %v1341_v37, 0.0  ;;  %v2292_v38 = vpop.f32.mrb[70].mxu0 }
 0x66b   :  { %v1356_v27 = vadd.f32 %v2292_v38, %v2967_v3  ;;  %v1350_v43 = vpop.f32.mrb[71].mxu0 }
 0x66c   :  { %v1351_v44 = vadd.f32 %v1350_v43, %v2971_v5  ;;  %2327 = vmatprep.mubr.msk.f32.mxu1 %vm457_vm1, %v1371_v36 }
 0x66d   :  { %2328 = vmatmul.mubr.msk.f32.gmra.mrb[52].mxu1 %vm457_vm1, %v1372_v41  ;;  %v1374_v45 = vmax.f32 %v1356_v27, 0.0 }
 0x66e   :  { %v1373_v58 = vmax.f32 %v1351_v44, 0.0 }
 0x670   :  { %2330 = vmatprep.mubr.msk.f32.mxu1 %vm457_vm1, %v1373_v58 }
 0x671   :  { %2331 = vmatmul.mubr.msk.f32.gmra.mrb[54].mxu1 %vm457_vm1, %v1374_v45 }
 0x728   :  { %v2311_v46 = vpop.f32.mrb[40].mxu1 }
 0x729   :  { %v1510_v3 = vadd.f32 %v2311_v46, %v3121_v59  ;;  %v1504_v48 = vpop.f32.mrb[41].mxu1 }
 0x72a   :  { %v1505_v5 = vadd.f32 %v3121_v59, %v1504_v48 }
 0x72b   :  { %v1584_v50 = vmax.f32 %v1510_v3, 0.0 }
 0x72c   :  { %v1583_v4 = vmax.f32 %v1505_v5, 0.0  ;;  %v2314_v6 = vpop.f32.mrb[42].mxu1 }
 0x72d   :  { %v1601_v60 = vsel %vm1599_vm2, %v1584_v50, 0.0  ;;  %v1520_v62 = vadd.f32 %v2314_v6, %v3121_v59  ;;  %v1514_v47 = vpop.f32.mrb[43].mxu1 }
 0x72e   :  { %v1600_v49 = vsel %vm1599_vm2, %v1583_v4, 0.0  ;;  %v1515_v2 = vadd.f32 %v3121_v59, %v1514_v47 }
 0x72f   :  { %v1602_v11 = vadd.f32 %v1601_v60, %v1600_v49  ;;  %v1586_v13 = vmax.f32 %v1520_v62, 0.0 }
 0x730   :  { %v1585_v7 = vmax.f32 %v1515_v2, 0.0  ;;  %v2317_v8 = vpop.f32.mrb[44].mxu1 }
 0x731   :  { %v1530_v54 = vadd.f32 %v2317_v8, %v3121_v59  ;;  %v1524_v56 = vpop.f32.mrb[45].mxu1  ;;  %v1605_v21 = vsel %vm1599_vm2, %v1586_v13, 0.0 }
 0x732   :  { %v1603_v16 = vsel %vm1599_vm2, %v1585_v7, 0.0  ;;  %v1525_v17 = vadd.f32 %v3121_v59, %v1524_v56 }
 0x733   :  { %v1604_v22 = vadd.f32 %v1603_v16, %v1602_v11  ;;  %v1588_v18 = vmax.f32 %v1530_v54, 0.0 }
 0x734   :  { %v1587_v19 = vmax.f32 %v1525_v17, 0.0  ;;  %v2320_v9 = vpop.f32.mrb[46].mxu1 }
 0x735   :  { %v3133_v34 = vadd.f32 %v1605_v21, %v1604_v22  ;;  %v1614_v26 = vsel %vm1599_vm2, %v1588_v18, 0.0  ;;  %v1540_v61 = vadd.f32 %v2320_v9, %v3121_v59  ;;  %v1534_v10 = vpop.f32.mrb[47].mxu1 }
 0x736   :  { %v1613_v63 = vsel %vm1599_vm2, %v1587_v19, 0.0  ;;  %v1535_v12 = vadd.f32 %v3121_v59, %v1534_v10 }
 0x737   :  { %v1615_v20 = vadd.f32 %v1614_v26, %v1613_v63  ;;  %v1590_v51 = vmax.f32 %v1540_v61, 0.0 }
 0x738   :  { %v1589_v39 = vmax.f32 %v1535_v12, 0.0  ;;  %v2323_v24 = vpop.f32.mrb[48].mxu1 }
 0x739   :  { %v1550_v52 = vadd.f32 %v2323_v24, %v3121_v59  ;;  %v1544_v55 = vpop.f32.mrb[49].mxu1  ;;  %v1618_v23 = vsel %vm1599_vm2, %v1590_v51, 0.0 }
 0x73a   :  { %v1616_v53 = vsel %vm1599_vm2, %v1589_v39, 0.0  ;;  %v1545_v57 = vadd.f32 %v3121_v59, %v1544_v55 }
 0x73b   :  { %v1617_v42 = vadd.f32 %v1616_v53, %v1615_v20  ;;  %v1592_v40 = vmax.f32 %v1550_v52, 0.0  ;;  %v1607_v20 = vrot.slane %v3133_v34, 4 }
 0x73c   :  { %v1591_v25 = vmax.f32 %v1545_v57, 0.0  ;;  %v2326_v0 = vpop.f32.mrb[50].mxu1 }
 0x73d   :  { %v1619_v28 = vadd.f32 %v1618_v23, %v1617_v42  ;;  %v1627_v29 = vsel %vm1599_vm2, %v1592_v40, 0.0  ;;  %v1560_v1 = vadd.f32 %v2326_v0, %v3121_v59  ;;  %v1554_v30 = vpop.f32.mrb[51].mxu1  ;;  %v1608_v51 = vadd.f32 %v1607_v20, %v3133_v34 }
 0x73e   :  { %v1626_v32 = vsel %vm1599_vm2, %v1591_v25, 0.0  ;;  %v1555_v14 = vadd.f32 %v3121_v59, %v1554_v30 }
 0x73f   :  { %v1628_v31 = vadd.f32 %v1627_v29, %v1626_v32  ;;  %v1620_v33 = vrot.slane %v1619_v28, 4  ;;  %v1594_v15 = vmax.f32 %v1560_v1, 0.0  ;;  %v1609_v39 = vrot.slane %v1608_v51, 2 }
 0x740   :  { %v1593_v35 = vmax.f32 %v1555_v14, 0.0  ;;  %v2329_v37 = vpop.f32.mrb[52].mxu1 }
 0x741   :  { %v1570_v36 = vadd.f32 %v2329_v37, %v3121_v59  ;;  %v1564_v38 = vpop.f32.mrb[53].mxu1  ;;  %v1621_v41 = vadd.f32 %v1620_v33, %v1619_v28  ;;  %v1631_v46 = vsel %vm1599_vm2, %v1594_v15, 0.0  ;;  %v1610_v24 = vadd.f32 %v1609_v39, %v1608_v51 }
 0x742   :  { %v1629_v27 = vsel %vm1599_vm2, %v1593_v35, 0.0  ;;  %v1565_v43 = vadd.f32 %v3121_v59, %v1564_v38 }
 0x743   :  { %v1630_v44 = vadd.f32 %v1629_v27, %v1628_v31  ;;  %v1596_v58 = vmax.f32 %v1570_v36, 0.0  ;;  %v1622_v45 = vrot.slane %v1621_v41, 2  ;;  %v1611_v55 = vrot.slane %v1610_v24, 1 }
 0x744   :  { %v1595_v3 = vmax.f32 %v1565_v43, 0.0  ;;  %v2332_v48 = vpop.f32.mrb[54].mxu1 }
 0x745   :  { %v1632_v5 = vadd.f32 %v1631_v46, %v1630_v44  ;;  %v1640_v50 = vsel %vm1599_vm2, %v1596_v58, 0.0  ;;  %v1580_v4 = vadd.f32 %v2332_v48, %v3121_v59  ;;  %v1574_v6 = vpop.f32.mrb[55].mxu1  ;;  %v1623_v60 = vadd.f32 %v1622_v45, %v1621_v41 }
 0x746   :  { %v1639_v62 = vsel %vm1599_vm2, %v1595_v3, 0.0  ;;  %v1575_v47 = vadd.f32 %v3121_v59, %v1574_v6  ;;  %v1612_v53 = vadd.f32 %v1611_v55, %v1610_v24 }
 0x747   :  { %v1633_v49 = vrot.slane %v1632_v5, 4  ;;  %v1641_v2 = vadd.f32 %v1640_v50, %v1639_v62  ;;  %v1624_v11 = vrot.slane %v1623_v60, 1  ;;  %v1598_v13 = vmax.f32 %v1580_v4, 0.0 }
 0x748   :  { %v1597_v7 = vmax.f32 %v1575_v47, 0.0 }
 0x749   :  { %v1625_v8 = vadd.f32 %v1624_v11, %v1623_v60  ;;  %v1634_v54 = vadd.f32 %v1633_v49, %v1632_v5  ;;  %v1644_v22 = vsel %vm1599_vm2, %v1598_v13, 0.0 }
 0x74a   :  { %v1642_v56 = vsel %vm1599_vm2, %v1597_v7, 0.0 }
 0x74b   :  { %v1643_v16 = vadd.f32 %v1642_v56, %v1641_v2  ;;  %1653 = vrot.lane.b32.xlu0 %v1625_v8, %s2541_s7  ;;  %v1635_v17 = vrot.slane %v1634_v54, 2 }
 0x74d   :  { %v1645_v18 = vadd.f32 %v1644_v22, %v1643_v16  ;;  %v1636_v21 = vadd.f32 %v1635_v17, %v1634_v54 }
 0x74f   :  { %v1637_v19 = vrot.slane %v1636_v21, 1  ;;  %v1646_v9 = vrot.slane %v1645_v18, 4 }
 0x751   :  { %v1638_v59 = vadd.f32 %v1637_v19, %v1636_v21  ;;  %v1647_v26 = vadd.f32 %v1646_v9, %v1645_v18 }
 0x753   :  { %1657 = vrot.lane.b32.xlu0 %v1638_v59, %s2542_s9  ;;  %v1648_v61 = vrot.slane %v1647_v26, 2 }
 0x755   :  { %v1649_v10 = vadd.f32 %v1648_v61, %v1647_v26 }
 0x757   :  { %v1650_v63 = vrot.slane %v1649_v10, 1 }
 0x759   :  { %v1651_v12 = vadd.f32 %v1650_v63, %v1649_v10 }
 0x75b   :  { %1661 = vrot.lane.b32.xlu1 %v1651_v12, %s2543_s10 }
 0x7bd   :  { %v1654_v52 = vpop.permute.xlu0 %1653 }
 0x7be   :  { %v1664_v42 = vsel %vm1599_vm2, %v1612_v53, %v1654_v52 }
 0x7c5   :  { %v1658_v57 = vpop.permute.xlu0 %1657 }
 0x7c6   :  { %v1665_v40 = vsel %vm457_vm1, %v1664_v42, %v1658_v57 }
 0x7cd   :  { %v1662_v23 = vpop.permute.xlu1 %1661 }
 0x7ce   :  { %v1667_v25 = vsel %vm1666_vm3, %v1665_v40, %v1662_v23 }
 0x7cf   :  { %v1668_v0 = vmax.f32 %v1667_v25, 0.0 }
 0x7d1   :  { %1669 = vst [vmem:[#allocation2] sm:$0x1] %v1668_v0 }
 0x7d2   :  { %2528 = shalt.err (!%p2525_p4)
}
 0x7d3   :  { %s2529_s2 = scalar_lea.hbm %s3181_s8, 16 }
 0x7d4   :  { %p2530_p5 = scmp.ne.s32.totalorder %s3181_s8, %s2529_s2  ;;  %p2533_p6 = scmp.lt.u32.totalorder %s2529_s2, %s3181_s8 }
 0x7d6   :  { %p2535_p7 = pnand %p2533_p6, %p2530_p5 }
 0x7d8   :  { %2538 = shalt.err (!%p2535_p7)
}
 0x7d9   :  { %1679 = dma.vmem_to_hbm [thread:$0]  %s1677_s12, 16, %s3181_s8, [#allocation3]  }
 0x7da   :  { %2539 = dma.done.wait [#allocation3], 16  }
 0x7db   :  { %2540 = vsyncadd [#allocation3], 4294967280 }
 0x7dc   :  { %1683 = vsyncpa [#allocation3], 1 }

</bundles_post_ra>
